<compile_context>
chip_gen: v5e
topology: v5e:2x2
jax: 0.10.0
libtpu: 0.0.40
codegen_flags: <defaults>
</compile_context>

<pallas_src>
import jax
import jax.numpy as jnp
from jax.experimental import pallas as pl
from jax.experimental.pallas import tpu as pltpu

LANE = 128


def _round_up(x, m):
    return (x + m - 1) // m * m


def critic_kernel(sa_ref, wf_ref, cb_ref, out_ref):
    """One grid step over `bt` batch rows.

    sa_ref : (bt, S+A)     concatenated [s, a] rows (bf16 or f32)
    wf_ref : (S+A, h_pad)  fused first-stage weight (f32)
    cb_ref : (2, h_pad)    row 0 = fused bias, row 1 = h2 weight row (f32)
    out_ref: (1, bt)       lane-dense output row (f32)
    """
    cb = cb_ref[...]                                        # (2, h_pad) f32
    # One fused MXU matmul; a bf16 sa operand is promoted in-register, the
    # matmul itself accumulates in f32 (K = S+A is tiny).
    x = jnp.dot(sa_ref[...], wf_ref[...],
                preferred_element_type=jnp.float32)          # (bt, h_pad)
    x = jnp.maximum(x + cb[0:1, :], 0.0)                     # bias + relu (VPU)
    # Final (hidden -> 1) projection as an M=1 matmul contracted over h_pad,
    # producing a LANE-DENSE (1, bt) row (no masked (bt,1) column stores).
    out_ref[...] = jax.lax.dot_general(
        cb[1:2, :], x, (((1,), (1,)), ((), ())),
        preferred_element_type=jnp.float32)


def fold_params(params, *, lane=LANE):
    """One-time algebraic folding + lane padding of the Critic_Model params.

    in1 + in2 = [s, a] @ [h1_w^T @ W1^T ; W2^T]   (one fused matmul)
    bias_fused = h1_b @ W1^T + b
    Hidden dim (50) is zero-padded to 128 so every intermediate is a full,
    lane-dense vreg; the padding is inert (bias pad = 0 -> relu(0) = 0 and
    the padded h2 weights are 0).
    """
    hidden = params["W1"].shape[0]                           # 50
    h_pad = _round_up(hidden, lane)                          # 128

    Ws = params["h1_w"].T @ params["W1"].T                   # (S, hidden)
    Wa = params["W2"].T                                      # (A, hidden)
    w_fused = jnp.concatenate([Ws, Wa], axis=0).astype(jnp.float32)
    bias_fused = (params["h1_b"] @ params["W1"].T
                  + params["b"].reshape(-1)).astype(jnp.float32)
    w2_row = params["h2_w"].reshape(-1).astype(jnp.float32)

    w_fused = jnp.pad(w_fused, ((0, 0), (0, h_pad - hidden)))      # (S+A, 128)
    cb = jnp.stack([jnp.pad(bias_fused, (0, h_pad - hidden)),
                    jnp.pad(w2_row, (0, h_pad - hidden))], axis=0)  # (2, 128)
    b2 = params["h2_b"].reshape(1, 1).astype(jnp.float32)
    return dict(w_fused=w_fused, cb=cb, b2=b2)


def critic_forward(s, a, folded, *, block_b=1024, matmul_dtype=jnp.bfloat16):
    """s: (B, S) or (S,); a: (B, A) or (A,). Returns (B, 1) f32 (B=1 if 1-D)."""
    s2 = jnp.atleast_2d(s).astype(jnp.float32)
    a2 = jnp.atleast_2d(a).astype(jnp.float32)
    B = s2.shape[0]
    SA = s2.shape[1] + a2.shape[1]
    h_pad = folded["w_fused"].shape[1]

    # Batch tile: one big grid step when the batch fits block_b (per-step
    # overhead dominates this tiny kernel).  Sub-32-bit matmul inputs need a
    # 16/32-row minimum sublane tile; multi-step tiles are forced to 128
    # multiples so the (1, bt) output blocks stay lane-dense.
    itemsize = jnp.dtype(matmul_dtype).itemsize
    sub = 8 if itemsize >= 4 else (16 if itemsize == 2 else 32)
    bt = _round_up(B, sub)
    if bt > block_b:
        bt = _round_up(block_b, LANE)
    Bp = _round_up(B, bt)

    sa = jnp.concatenate([s2, a2], axis=1)                   # (B, S+A)
    if Bp != B:
        sa = jnp.pad(sa, ((0, Bp - B), (0, 0)))
    sa = sa.astype(matmul_dtype)   # only activations are cast; weights stay f32

    out = pl.pallas_call(
        critic_kernel,
        out_shape=jax.ShapeDtypeStruct((1, Bp), jnp.float32),
        grid=(Bp // bt,),
        in_specs=[
            pl.BlockSpec((bt, SA), lambda i: (i, 0)),        # [s, a] batch tile
            pl.BlockSpec((SA, h_pad), lambda i: (0, 0)),     # fused weights
            pl.BlockSpec((2, h_pad), lambda i: (0, 0)),      # bias row + h2 row
        ],
        out_specs=pl.BlockSpec((1, bt), lambda i: (0, i)),   # lane-dense row
        compiler_params=pltpu.CompilerParams(
            dimension_semantics=("parallel",)),              # v7x: 2 TCs
    )(sa, folded["w_fused"], folded["cb"])

    # h2 bias added outside the kernel (the (1,1) input block was dropped).
    return out.reshape(Bp, 1)[:B] + folded["b2"]


def init_params(key, state_space_size, action_space_size, hidden=50):
    ks = jax.random.split(key, 7)
    # nn.Linear(state_space_size, 50)
    h1_w = jax.random.normal(ks[0], (hidden, state_space_size), jnp.float32) * 0.1
    h1_b = jax.random.normal(ks[1], (hidden,), jnp.float32) * 0.1
    # nn.Linear(50, 1)
    h2_w = jax.random.normal(ks[2], (1, hidden), jnp.float32) * 0.1
    h2_b = jax.random.normal(ks[3], (1,), jnp.float32) * 0.1
    # nn.init.normal_ parameters
    W1 = jax.random.normal(ks[4], (hidden, hidden), jnp.float32)
    W2 = jax.random.normal(ks[5], (hidden, action_space_size), jnp.float32)
    b = jax.random.normal(ks[6], (1, hidden), jnp.float32)
    return dict(h1_w=h1_w, h1_b=h1_b, h2_w=h2_w, h2_b=h2_b, W1=W1, W2=W2, b=b)


def reference_forward(s, a, p):
    """Pure-JAX f32 reference mirroring the PyTorch forward (batched)."""
    s2 = jnp.atleast_2d(s)
    a2 = jnp.atleast_2d(a)
    h1 = s2 @ p["h1_w"].T + p["h1_b"]               # (B, 50)
    in1 = h1 @ p["W1"].T                            # (B, 50)
    in2 = a2 @ p["W2"].T                            # (B, 50)
    x = jnp.maximum(in1 + in2 + p["b"], 0.0)        # (B, 50)
    return x @ p["h2_w"].T + p["h2_b"]              # (B, 1)


if __name__ == "__main__":
    state_space_size = 8
    action_space_size = 4
    batch = 256

    key = jax.random.PRNGKey(0)
    k_p, k_s, k_a = jax.random.split(key, 3)
    params = init_params(k_p, state_space_size, action_space_size)

    # Folding runs ONCE per parameter set (hoisted out of the forward call).
    folded = jax.tree_util.tree_map(jax.block_until_ready, fold_params(params))

    s = jax.random.normal(k_s, (batch, state_space_size), jnp.float32)
    a = jax.random.normal(k_a, (batch, action_space_size), jnp.float32)

    ref = reference_forward(s, a, params)

    # Default path: bf16 activations, f32 weights, ONE grid step of 256 rows,
    # lane-dense (1, 256) output.
    out = jax.block_until_ready(critic_forward(s, a, folded))
    assert out.shape == (batch, 1), out.shape
    assert jnp.allclose(out, ref, atol=5e-2, rtol=5e-2), \
        float(jnp.max(jnp.abs(out - ref)))

    # Full-f32 path, tight tolerance.
    out32 = jax.block_until_ready(
        critic_forward(s, a, folded, matmul_dtype=jnp.float32))
    assert out32.shape == (batch, 1), out32.shape
    assert jnp.allclose(out32, ref, atol=1e-3, rtol=1e-3), \
        float(jnp.max(jnp.abs(out32 - ref)))

    # Single (s, a) pair, matching the PyTorch module's forward signature.
    out1 = jax.block_until_ready(critic_forward(s[0], a[0], folded))
    assert out1.shape == (1, 1), out1.shape
    assert jnp.allclose(out1, ref[0:1], atol=5e-2, rtol=5e-2)

    print("KERNEL_OK")
</pallas_src>

<mosaic_0001>
module attributes {stable_mosaic.version = 11 : i64} {
  func.func @critic_kernel(%arg0: i32, %arg1: memref<256x12xbf16, #tpu.memory_space<vmem>>, %arg2: memref<12x128xf32, #tpu.memory_space<vmem>>, %arg3: memref<2x128xf32, #tpu.memory_space<vmem>>, %arg4: memref<1x256xf32, #tpu.memory_space<vmem>>) attributes {dimension_semantics = [#tpu.dimension_semantics<parallel>], iteration_bounds = array<i64: 1>, scalar_prefetch = 0 : i64, scratch_operands = 0 : i64, tpu.core_type = #tpu.core_type<tc>, window_params = [{transform_indices = @transform_0, window_bounds = array<i64: 256, 12>}, {pipeline_mode = #tpu.pipeline_mode<synchronous>, transform_indices = @transform_1, window_bounds = array<i64: 12, 128>}, {pipeline_mode = #tpu.pipeline_mode<synchronous>, transform_indices = @transform_2, window_bounds = array<i64: 2, 128>}, {transform_indices = @transform_3, window_bounds = array<i64: 1, 256>}]} {
    %c0 = arith.constant 0 : index
    %c0_0 = arith.constant 0 : index
    %0 = vector.load %arg3[%c0, %c0_0] : memref<2x128xf32, #tpu.memory_space<vmem>>, vector<2x128xf32>
    %c0_1 = arith.constant 0 : index
    %c0_2 = arith.constant 0 : index
    %1 = vector.load %arg1[%c0_1, %c0_2] : memref<256x12xbf16, #tpu.memory_space<vmem>>, vector<256x12xbf16>
    %c0_3 = arith.constant 0 : index
    %c0_4 = arith.constant 0 : index
    %2 = vector.load %arg2[%c0_3, %c0_4] : memref<12x128xf32, #tpu.memory_space<vmem>>, vector<12x128xf32>
    %cst = arith.constant dense<0.000000e+00> : vector<256x128xf32>
    %3 = tpu.matmul %1, %2, %cst {dimension_numbers = #tpu.dot_dimension_numbers<[1], [0], [0], [1], [0, 0, 1, 1], [], []>} : vector<256x12xbf16>, vector<12x128xf32>, vector<256x128xf32> -> vector<256x128xf32>
    %4 = vector.extract_strided_slice %0 {offsets = [0, 0], sizes = [1, 128], strides = [1, 1]} : vector<2x128xf32> to vector<1x128xf32>
    %5 = vector.broadcast %4 : vector<1x128xf32> to vector<256x128xf32>
    %6 = arith.addf %3, %5 : vector<256x128xf32>
    %cst_5 = arith.constant 0.000000e+00 : f32
    %7 = vector.broadcast %cst_5 : f32 to vector<256x128xf32>
    %8 = arith.maximumf %6, %7 : vector<256x128xf32>
    %9 = vector.extract_strided_slice %0 {offsets = [1, 0], sizes = [1, 128], strides = [1, 1]} : vector<2x128xf32> to vector<1x128xf32>
    %cst_6 = arith.constant dense<0.000000e+00> : vector<1x256xf32>
    %10 = tpu.matmul %9, %8, %cst_6 {dimension_numbers = #tpu.dot_dimension_numbers<[1], [1], [0], [0], [0, 0, 1, 0], [], []>} : vector<1x128xf32>, vector<256x128xf32>, vector<1x256xf32> -> vector<1x256xf32>
    %c0_7 = arith.constant 0 : index
    %c0_8 = arith.constant 0 : index
    %11 = vector.load %arg4[%c0_7, %c0_8] : memref<1x256xf32, #tpu.memory_space<vmem>>, vector<1x256xf32>
    tpu.vector_store %arg4[%c0_7, %c0_8], %10 {strides = array<i32>} : memref<1x256xf32, #tpu.memory_space<vmem>>, vector<1x256xf32>,
    return
  }
  func.func @transform_0(%arg0: i32) -> (i32, i32) {
    %c0_i32 = arith.constant 0 : i32
    %c0_i32_0 = arith.constant 0 : i32
    return %arg0, %c0_i32 : i32, i32
  }
  func.func @transform_1(%arg0: i32) -> (i32, i32) {
    %c0_i32 = arith.constant 0 : i32
    %c0_i32_0 = arith.constant 0 : i32
    %c0_i32_1 = arith.constant 0 : i32
    return %c0_i32, %c0_i32_0 : i32, i32
  }
  func.func @transform_2(%arg0: i32) -> (i32, i32) {
    %c0_i32 = arith.constant 0 : i32
    %c0_i32_0 = arith.constant 0 : i32
    %c0_i32_1 = arith.constant 0 : i32
    return %c0_i32, %c0_i32_0 : i32, i32
  }
  func.func @transform_3(%arg0: i32) -> (i32, i32) {
    %c0_i32 = arith.constant 0 : i32
    %c0_i32_0 = arith.constant 0 : i32
    return %c0_i32, %arg0 : i32, i32
  }
}

</mosaic_0001>

<bundles_post_ra>
// kernel: tpu_custom_call.1
= control target key start
LH: loop header
LB: loop body
LE: loop exit
PB: predicated region body
PF: predicated region fallthrough
CT: control target
= control target key end

     0   :  { %vm180_vm0 = vcmask 1043456   ;;  %vm131_vm1 = vcmask 97280   ;;  %s672_s0 = inlined_call_operand.vmem [shape: bf16[256,12], index: 0, kind: input, shape index: {}]   ;;  %s673_s1 = inlined_call_operand.vmem [shape: f32[12,128], index: 1, kind: input, shape index: {}]   ;;  %s674_s2 = inlined_call_operand.vmem [shape: f32[2,128], index: 2, kind: input, shape index: {}]   ;;  %s675_s3 = inlined_call_operand.hbm [shape: f32[1,256], index: 3, kind: output, shape index: {}]  }
   0x1   :  { %v49_v0 = vld [vmem:[%s673_s1 + $0x8] sm:$0xf]  ;;  %v48_v1 = vld [vmem:[%s673_s1] sm:$0xff]  ;;  %v467_v2 = vld [vmem:[%s672_s0 + $0x18] sm:$0xff] }
   0x2   :  { %480 = vmatpush.msk.msra.mxu1 %vm180_vm0, %v49_v0  ;;  %482 = vmatpush.msk.msra.mxu3 %vm180_vm0, %v49_v0  ;;  %v475_v3 = vld [vmem:[%s672_s0 + $0x58] sm:$0xff] }
   0x3   :  { %481 = vmatpush.msk.msra.mxu2 %vm180_vm0, %v49_v0  ;;  %447 = vmatpush.msk.msra.mxu0 %vm180_vm0, %v49_v0 }
   0x4   :  { %8 = vsyncpa [#allocation3], 0  ;;  %483 = vmatpush.msra.mxu1 %v48_v1  ;;  %485 = vmatpush.msra.mxu3 %v48_v1  ;;  %v471_v4 = vld [vmem:[%s672_s0 + $0x38] sm:$0xff]  ;;  %v464_v5 = vld [vmem:[%s672_s0] sm:$0xff]  ;;  %s374_s23 = sshll.u32 %s675_s3, 4  ;;  %vm359_vm2 = vcmask 1040384   ;;  %s375_s23 = int_to_ptr.hbm [resolvable:$true] %s374_s23 }
   0x5   :  { %451 = vmatmul.msk.bf16.vlgmr.msra.gmra.mxu1 %vm131_vm1, %v467_v2  ;;  %459 = vmatmul.msk.bf16.vlgmr.msra.gmra.mxu3 %vm131_vm1, %v475_v3  ;;  %v468_v6 = vld [vmem:[%s672_s0 + $0x20] sm:$0xff]  ;;  %v465_v8 = vld [vmem:[%s672_s0 + $0x8] sm:$0xff]  ;;  %v466_v12 = vld [vmem:[%s672_s0 + $0x10] sm:$0xff] }
   0x6   :  { %484 = vmatpush.msra.mxu2 %v48_v1  ;;  %199 = vmatpush.msra.mxu0 %v48_v1  ;;  %v476_v7 = vld [vmem:[%s672_s0 + $0x60] sm:$0xff]  ;;  %v469_v10 = vld [vmem:[%s672_s0 + $0x28] sm:$0xff]  ;;  %v470_v14 = vld [vmem:[%s672_s0 + $0x30] sm:$0xff] }
   0x7   :  { %455 = vmatmul.msk.bf16.vlgmr.msra.gmra.mxu2 %vm131_vm1, %v471_v4  ;;  %448 = vmatmul.msk.bf16.vlgmr.msra.gmra.mxu0 %vm131_vm1, %v464_v5  ;;  %v472_v9 = vld [vmem:[%s672_s0 + $0x40] sm:$0xff]  ;;  %v477_v11 = vld [vmem:[%s672_s0 + $0x68] sm:$0xff]  ;;  %v478_v15 = vld [vmem:[%s672_s0 + $0x70] sm:$0xff] }
   0x8   :  { %v473_v13 = vld [vmem:[%s672_s0 + $0x48] sm:$0xff]  ;;  %v474_v16 = vld [vmem:[%s672_s0 + $0x50] sm:$0xff]  ;;  %v479_v17 = vld [vmem:[%s672_s0 + $0x78] sm:$0xff]  ;;  %s513_s0 = smov [#allocation2]  }
   0x9   :  { %v609_v22 = vld [vmem:[%s674_s2] sm:$0x3]  ;;  %s372_s2 = sshll.u32 %s513_s0, 4  ;;  %s373_s2 = int_to_ptr.vmem [resolvable:$true] %s372_s2 }
   0xa   :  { %v614_v24 = vperm.slane %v609_v22, 0 }
  0x15   :  { %452 = vmatmul.msk.bf16.gmra.mxu1 %vm131_vm1, %v468_v6  ;;  %460 = vmatmul.msk.bf16.gmra.mxu3 %vm131_vm1, %v476_v7 }
  0x17   :  { %449 = vmatmul.msk.bf16.gmra.mxu0 %vm131_vm1, %v465_v8  ;;  %456 = vmatmul.msk.bf16.gmra.mxu2 %vm131_vm1, %v472_v9 }
  0x25   :  { %453 = vmatmul.msk.bf16.gmra.mxu1 %vm131_vm1, %v469_v10  ;;  %461 = vmatmul.msk.bf16.gmra.mxu3 %vm131_vm1, %v477_v11 }
  0x27   :  { %450 = vmatmul.msk.bf16.gmra.mxu0 %vm131_vm1, %v466_v12  ;;  %457 = vmatmul.msk.bf16.gmra.mxu2 %vm131_vm1, %v473_v13 }
  0x35   :  { %454 = vmatmul.msk.bf16.gmra.mxu1 %vm131_vm1, %v470_v14  ;;  %462 = vmatmul.msk.bf16.gmra.mxu3 %vm131_vm1, %v478_v15 }
  0x37   :  { %458 = vmatmul.msk.bf16.gmra.mxu2 %vm131_vm1, %v474_v16 }
  0x45   :  { %463 = vmatmul.msk.bf16.gmra.mxu3 %vm131_vm1, %v479_v17 }
  0x82   :  { %v216_v18 = vpop.f32.mrf.mxu1 }
  0x83   :  { %v217_v4 = vadd.f32 %v216_v18, %v614_v24 }
  0x84   :  { %v622_v35 = vpop.f32.mrf.mxu0 }
  0x85   :  { %v287_v10 = vmax.f32 %v217_v4, 0.0 }
  0x88   :  { %v604_v19 = vpop.f32.mrf.mxu3 }
  0x8a   :  { %v218_v20 = vpop.f32.mrf.mxu1  ;;  %v236_v21 = vpop.f32.mrf.mxu2 }
  0x8b   :  { %v237_v27 = vadd.f32 %v236_v21, %v614_v24  ;;  %v219_v62 = vadd.f32 %v218_v20, %v614_v24 }
  0x8c   :  { %v624_v38 = vpop.f32.mrf.mxu0 }
  0x8d   :  { %v295_v31 = vmax.f32 %v237_v27, 0.0  ;;  %v288_v5 = vmax.f32 %v219_v62, 0.0 }
  0x90   :  { %v611_v23 = vpop.f32.mrf.mxu3 }
  0x92   :  { %v221_v25 = vpop.f32.mrf.mxu1  ;;  %v238_v26 = vpop.f32.mrf.mxu2 }
  0x93   :  { %v239_v28 = vadd.f32 %v238_v26, %v614_v24  ;;  %v222_v59 = vadd.f32 %v221_v25, %v614_v24 }
  0x94   :  { %v206_v41 = vpop.f32.mrf.mxu0 }
  0x95   :  { %v296_v29 = vmax.f32 %v239_v28, 0.0  ;;  %v289_v63 = vmax.f32 %v222_v59, 0.0  ;;  %v207_v26 = vadd.f32 %v206_v41, %v614_v24 }
  0x97   :  { %316 = vmatpush.xpose.msrb.mxu1 %v296_v29 }
  0x98   :  { %v618_v30 = vpop.f32.mrf.mxu3 }
  0x9a   :  { %v223_v32 = vpop.f32.mrf.mxu1  ;;  %v629_v51 = vpop.f32.mrf.mxu2 }
  0x9b   :  { %317 = vmatpush.xpose.msrb.mxu1 %v295_v31  ;;  %v224_v56 = vadd.f32 %v223_v32, %v614_v24  ;;  %v283_v31 = vmax.f32 %v207_v26, 0.0  ;;  %v204_v32 = vadd.f32 %v624_v38, %v614_v24  ;;  %v257_v38 = vadd.f32 %v604_v19, %v614_v24 }
  0x9c   :  { %v208_v50 = vpop.f32.mrf.mxu0 }
  0x9d   :  { %v290_v60 = vmax.f32 %v224_v56, 0.0  ;;  %v209_v17 = vadd.f32 %v208_v50, %v614_v24 }
  0x9f   :  { %v284_v27 = vmax.f32 %v209_v17, 0.0 }
  0xa0   :  { %v620_v33 = vpop.f32.mrf.mxu3 }
  0xa1   :  { %v264_v28 = vadd.f32 %v620_v33, %v614_v24  ;;  %v259_v33 = vadd.f32 %v611_v23, %v614_v24 }
  0xa2   :  { %v226_v34 = vpop.f32.mrf.mxu1  ;;  %v633_v58 = vpop.f32.mrf.mxu2 }
  0xa3   :  { %v227_v52 = vadd.f32 %v226_v34, %v614_v24 }
  0xa4   :  { %v211_v57 = vpop.f32.mrf.mxu0 }
  0xa5   :  { %v291_v54 = vmax.f32 %v227_v52, 0.0  ;;  %v212_v13 = vadd.f32 %v211_v57, %v614_v24  ;;  %v242_v52 = vadd.f32 %v629_v51, %v614_v24 }
  0xa7   :  { %v285_v18 = vmax.f32 %v212_v13, 0.0 }
  0xa8   :  { %v266_v36 = vpop.f32.mrf.mxu3 }
  0xa9   :  { %v267_v21 = vadd.f32 %v266_v36, %v614_v24  ;;  %v262_v36 = vadd.f32 %v618_v30, %v614_v24 }
  0xaa   :  { %v228_v37 = vpop.f32.mrf.mxu1  ;;  %v246_v6 = vpop.f32.mrf.mxu2 }
  0xab   :  { %v229_v47 = vadd.f32 %v228_v37, %v614_v24  ;;  %v307_v29 = vmax.f32 %v267_v21, 0.0  ;;  %v306_v37 = vmax.f32 %v264_v28, 0.0  ;;  %v305_v41 = vmax.f32 %v262_v36, 0.0 }
  0xac   :  { %v213_v3 = vpop.f32.mrf.mxu0  ;;  %v247_v19 = vadd.f32 %v246_v6, %v614_v24 }
  0xad   :  { %v292_v53 = vmax.f32 %v229_v47, 0.0  ;;  %v214_v9 = vadd.f32 %v213_v3, %v614_v24 }
  0xae   :  { %v299_v50 = vmax.f32 %v247_v19, 0.0 }
  0xaf   :  { %v286_v14 = vmax.f32 %v214_v9, 0.0 }
  0xb0   :  { %v268_v39 = vpop.f32.mrf.mxu3 }
  0xb1   :  { %v269_v15 = vadd.f32 %v268_v39, %v614_v24  ;;  %v202_v39 = vadd.f32 %v622_v35, %v614_v24  ;;  %v303_v35 = vmax.f32 %v257_v38, 0.0 }
  0xb2   :  { %v231_v40 = vpop.f32.mrf.mxu1  ;;  %v248_v20 = vpop.f32.mrf.mxu2 }
  0xb3   :  { %v232_v44 = vadd.f32 %v231_v40, %v614_v24  ;;  %v308_v25 = vmax.f32 %v269_v15, 0.0  ;;  %v282_v40 = vmax.f32 %v204_v32, 0.0  ;;  %v249_v47 = vadd.f32 %v248_v20, %v614_v24 }
  0xb5   :  { %v293_v48 = vmax.f32 %v232_v44, 0.0  ;;  %v314_v44 = vrot.slane %v609_v22, 1  ;;  %v244_v22 = vadd.f32 %v633_v58, %v614_v24 }
  0xb8   :  { %v271_v42 = vpop.f32.mrf.mxu3 }
  0xb9   :  { %v272_v11 = vadd.f32 %v271_v42, %v614_v24  ;;  %v281_v42 = vmax.f32 %v202_v39, 0.0 }
  0xba   :  { %v233_v43 = vpop.f32.mrf.mxu1  ;;  %v251_v34 = vpop.f32.mrf.mxu2 }
  0xbb   :  { %v234_v45 = vadd.f32 %v233_v43, %v614_v24  ;;  %v309_v16 = vmax.f32 %v272_v11, 0.0  ;;  %v304_v43 = vmax.f32 %v259_v33, 0.0  ;;  %v252_v23 = vadd.f32 %v251_v34, %v614_v24 }
  0xbd   :  { %v294_v46 = vmax.f32 %v234_v45, 0.0 }
  0xbf   :  { %318 = vmatpush.xpose.msrb.mxu1 %v294_v46 }
  0xc0   :  { %v273_v49 = vpop.f32.mrf.mxu3 }
  0xc1   :  { %v274_v7 = vadd.f32 %v273_v49, %v614_v24  ;;  %v300_v49 = vmax.f32 %v249_v47, 0.0 }
  0xc2   :  { %v253_v30 = vpop.f32.mrf.mxu2 }
  0xc3   :  { %319 = vmatpush.xpose.msrb.mxu1 %v293_v48  ;;  %v310_v12 = vmax.f32 %v274_v7, 0.0  ;;  %v254_v45 = vadd.f32 %v253_v30, %v614_v24  ;;  %v301_v48 = vmax.f32 %v252_v23, 0.0 }
  0xc5   :  { %v302_v46 = vmax.f32 %v254_v45, 0.0 }
  0xc7   :  { %320 = vmatpush.xpose.msrb.mxu1 %v292_v53  ;;  %v298_v53 = vmax.f32 %v244_v22, 0.0 }
  0xc8   :  { %v276_v55 = vpop.f32.mrf.mxu3 }
  0xc9   :  { %v277_v1 = vadd.f32 %v276_v55, %v614_v24  ;;  %v362_v55 = vlaneseq }
  0xcb   :  { %321 = vmatpush.xpose.msrb.mxu1 %v291_v54  ;;  %v311_v8 = vmax.f32 %v277_v1, 0.0  ;;  %v297_v54 = vmax.f32 %v242_v52, 0.0  ;;  %vm364_vm3 = vcmp.lt.s32.totalorder %v362_v55, 256 }
  0xcf   :  { %322 = vmatpush.xpose.msrb.mxu1 %v290_v60 }
  0xd0   :  { %v278_v61 = vpop.f32.mrf.mxu3 }
  0xd1   :  { %v279_v0 = vadd.f32 %v278_v61, %v614_v24 }
  0xd3   :  { %v312_v2 = vmax.f32 %v279_v0, 0.0  ;;  %323 = vmatpush.xpose.msrb.mxu1 %v289_v63 }
  0xd5   :  { %336 = vmatpush.xpose.msrb.mxu2 %v312_v2 }
  0xd7   :  { %324 = vmatpush.xpose.msrb.mxu1 %v288_v5 }
  0xd9   :  { %337 = vmatpush.xpose.msrb.mxu2 %v311_v8 }
  0xdb   :  { %325 = vmatpush.xpose.msrb.mxu1 %v287_v10 }
  0xdd   :  { %338 = vmatpush.xpose.msrb.mxu2 %v310_v12 }
  0xdf   :  { %326 = vmatpush.xpose.msrb.mxu1 %v286_v14 }
  0xe1   :  { %339 = vmatpush.xpose.msrb.mxu2 %v309_v16 }
  0xe3   :  { %327 = vmatpush.xpose.msrb.mxu1 %v285_v18 }
  0xe5   :  { %340 = vmatpush.xpose.msrb.mxu2 %v308_v25 }
  0xe7   :  { %328 = vmatpush.xpose.msrb.mxu1 %v284_v27 }
  0xe9   :  { %341 = vmatpush.xpose.msrb.mxu2 %v307_v29 }
  0xeb   :  { %329 = vmatpush.xpose.msrb.mxu1 %v283_v31 }
  0xed   :  { %342 = vmatpush.xpose.msrb.mxu2 %v306_v37 }
  0xef   :  { %330 = vmatpush.xpose.msrb.mxu1 %v282_v40 }
  0xf1   :  { %343 = vmatpush.xpose.msrb.mxu2 %v305_v41 }
  0xf3   :  { %331 = vmatpush.xpose.msrb.mxu1 %v281_v42 }
  0xf5   :  { %344 = vmatpush.xpose.msrb.mxu2 %v304_v43 }
  0xf6   :  { %332 = vmatmul.f32.vlgmr.msrb.gmra.mxu1 %v314_v44 }
  0xf9   :  { %345 = vmatpush.xpose.msrb.mxu2 %v303_v35 }
  0xfd   :  { %346 = vmatpush.xpose.msrb.mxu2 %v302_v46 }
 0x101   :  { %347 = vmatpush.xpose.msrb.mxu2 %v301_v48 }
 0x105   :  { %348 = vmatpush.xpose.msrb.mxu2 %v300_v49 }
 0x109   :  { %349 = vmatpush.xpose.msrb.mxu2 %v299_v50 }
 0x10d   :  { %350 = vmatpush.xpose.msrb.mxu2 %v298_v53 }
 0x111   :  { %351 = vmatpush.xpose.msrb.mxu2 %v297_v54 }
 0x114   :  { %352 = vmatmul.f32.vlgmr.msrb.gmra.mxu2 %v314_v44 }
 0x173   :  { %v333_v57 = vpop.f32.mrf.mxu1 }
 0x197   :  { %v353_v56 = vpop.f32.mrf.mxu2 }
 0x198   :  { %v358_v58 = vrot.slane %v353_v56, 7 }
 0x19a   :  { %v360_v24 = vsel %vm359_vm2, %v333_v57, %v358_v58 }
 0x19b   :  { %366 = vst.msk [vmem:[#allocation2] sm:$0x3] %vm364_vm3, %v360_v24 }
 0x19c   :  { %377 = dma.vmem_to_hbm [thread:$0]  %s373_s2, 32, %s375_s23, [#allocation3]  }
 0x19d   :  { %511 = dma.done.wait [#allocation3], 32  }
 0x19e   :  { %512 = vsyncadd [#allocation3], 4294967264 }
 0x19f   :  { %382 = vsyncpa [#allocation3], 1 }

</bundles_post_ra>
